<compile_context>
chip_gen: v7x
topology: tpu7x:2x2x1
jax: 0.10.0
libtpu: 0.0.40
codegen_flags: <defaults>
</compile_context>

<pallas_src>
import numpy as np
import jax
import jax.numpy as jnp
from jax.experimental import pallas as pl
from jax.experimental.pallas import tpu as pltpu


def _concept_embed_kernel(x_ref, h_ref, o_ref):
    # x_ref: (B, D) f32 -- dim 1 of the (B, 1, D) input was squeezed by the
    # BlockSpec at DMA time.  Cast to bf16 on the VPU (hidden under the DMA).
    x = x_ref[...].astype(jnp.bfloat16)
    # logits = x @ local_H^T : canonical (B, D) x (D, C) -> (B, C), bf16
    # operands with f32 accumulation.  Already (B, C); no transposes.
    logits = jnp.dot(x, h_ref[...], preferred_element_type=jnp.float32)
    # Row softmax over concepts (dim=1), max-stabilized.
    m = jnp.max(logits, axis=1, keepdims=True)
    e = jnp.exp(logits - m)
    inv = pl.reciprocal(jnp.sum(e, axis=1, keepdims=True), approx=False)
    o_ref[...] = (e * inv).astype(o_ref.dtype)


def prepare_local_h(ancestor_multihot, embed_weight):
    """One-time constant prep (model load / weight update), NOT per call.

    local_H = A @ W where A[i, j] = multiplicity of ancestor j for concept i
    (the dense form of the ragged per-concept embedding sum).  Stored
    pre-transposed to (D, C) and cast to bf16 for the MXU.
    """
    local_h = jnp.dot(
        ancestor_multihot.astype(jnp.float32),
        embed_weight.astype(jnp.float32),
        precision=jax.lax.Precision.HIGHEST,
    )                                                   # (C, D)
    return jnp.transpose(local_h).astype(jnp.bfloat16)  # (D, C)


def concept_embed_forward(x, local_h_t, y=None):
    """Pallas implementation of ConceptEmbedModel.forward.

    x          : (B, 1, D) float32 -- PyTorch-style input (dim 1 squeezed here)
    local_h_t  : (D, C) bfloat16  -- from prepare_local_h (frozen A @ W, hoisted)
    y          : unused by the reference forward
    returns    : (B, C) float32 softmax over concepts.
    """
    del y  # unused in the reference forward
    B = x.shape[0]
    D, C = local_h_t.shape

    return pl.pallas_call(
        _concept_embed_kernel,
        out_shape=jax.ShapeDtypeStruct((B, C), jnp.float32),
        grid=(1,),
        in_specs=[
            # Squeeze the unit dim of (B, 1, D) at DMA time -> kernel sees (B, D).
            pl.BlockSpec((B, pl.Squeezed(), D), lambda i: (0, 0, 0)),
            pl.BlockSpec((D, C), lambda i: (0, 0)),
        ],
        out_specs=pl.BlockSpec((B, C), lambda i: (0, 0)),
        compiler_params=pltpu.CompilerParams(
            dimension_semantics=("arbitrary",)),
    )(x, local_h_t)


if __name__ == "__main__":
    # --- deterministic synthetic setup (mirrors __init__ shapes) ----------
    a = 16                 # embedding table rows ("a" in the module)
    embedding_dim = 200    # hardcoded by local_H = zeros(C, 200) in the module
    num_concepts = 8
    batch = 4

    key = jax.random.PRNGKey(0)
    k_w, k_x = jax.random.split(key, 2)

    # pretrained_weight for nn.Embedding(a, embedding_dim)
    pretrained_weight = jax.random.normal(k_w, (a, embedding_dim), jnp.float32)

    # ancestor_hierarchy.rows[i] -> deterministic variable-length ancestor lists
    ancestor_rows = [
        sorted({(3 * i + 1) % a, (5 * i + 2) % a, (7 * i + 3) % a})[: (i % 3) + 1]
        for i in range(num_concepts)
    ]
    # Multi-hot matrix A (C, a): sum of ancestor embeddings == A @ W
    A_np = np.zeros((num_concepts, a), dtype=np.float32)
    for i, rows in enumerate(ancestor_rows):
        for j in rows:
            A_np[i, j] += 1.0
    ancestor_multihot = jnp.asarray(A_np)

    # x input: PyTorch forward squeezes dim 1, so shape is (B, 1, D)
    x = jax.random.normal(k_x, (batch, 1, embedding_dim), jnp.float32)
    y = None  # unused by forward

    # One-time hoisted constant prep, then the per-call fused kernel.
    local_h_t = jax.block_until_ready(
        prepare_local_h(ancestor_multihot, pretrained_weight))
    out = concept_embed_forward(x, local_h_t, y)
    out = jax.block_until_ready(out)
    out_np = np.asarray(out)

    # --- parity check (kernel mechanics) -----------------------------------
    # Reference follows the PyTorch association order, fed the same
    # bf16-rounded operands the kernel consumes (upcast to f32, numpy math),
    # so the only deltas are f32 accumulation-order rounding.  Deviation from
    # the true f32/f64 PyTorch forward is bf16-operand level (see header).
    h_ref = np.asarray(local_h_t).astype(np.float32)                    # (D, C)
    x_ref = np.asarray(x.astype(jnp.bfloat16)).astype(np.float32)[:, 0, :]
    logits_ref = x_ref @ h_ref                                          # (B, C)
    logits_ref -= logits_ref.max(axis=1, keepdims=True)
    e_ref = np.exp(logits_ref)
    ref = e_ref / e_ref.sum(axis=1, keepdims=True)

    np.testing.assert_allclose(out_np, ref, rtol=1e-4, atol=1e-5)
    assert out_np.shape == (batch, num_concepts)
    assert np.allclose(out_np.sum(axis=1), 1.0, atol=1e-5)

    print("KERNEL_OK")
</pallas_src>

<mosaic_0001>
module attributes {stable_mosaic.version = 11 : i64} {
  func.func @_concept_embed_kernel(%arg0: i32, %arg1: memref<4x1x200xf32, #tpu.memory_space<vmem>>, %arg2: memref<200x8xbf16, #tpu.memory_space<vmem>>, %arg3: memref<4x8xf32, #tpu.memory_space<vmem>>) attributes {dimension_semantics = [#tpu.dimension_semantics<arbitrary>], iteration_bounds = array<i64: 1>, scalar_prefetch = 0 : i64, scratch_operands = 0 : i64, tpu.core_type = #tpu.core_type<tc>, window_params = [{pipeline_mode = #tpu.pipeline_mode<synchronous>, transform_indices = @transform_0, window_bounds = array<i64: 4, 1, 200>}, {pipeline_mode = #tpu.pipeline_mode<synchronous>, transform_indices = @transform_1, window_bounds = array<i64: 200, 8>}, {pipeline_mode = #tpu.pipeline_mode<synchronous>, transform_indices = @transform_2, window_bounds = array<i64: 4, 8>}]} {
    %c0 = arith.constant 0 : index
    %c0_0 = arith.constant 0 : index
    %c0_1 = arith.constant 0 : index
    %0 = vector.load %arg1[%c0, %c0_0, %c0_1] : memref<4x1x200xf32, #tpu.memory_space<vmem>>, vector<4x1x200xf32>
    %1 = vector.shape_cast %0 : vector<4x1x200xf32> to vector<4x200xf32>
    %2 = arith.truncf %1 : vector<4x200xf32> to vector<4x200xbf16>
    %c0_2 = arith.constant 0 : index
    %c0_3 = arith.constant 0 : index
    %3 = vector.load %arg2[%c0_2, %c0_3] : memref<200x8xbf16, #tpu.memory_space<vmem>>, vector<200x8xbf16>
    %cst = arith.constant dense<0.000000e+00> : vector<4x8xf32>
    %4 = tpu.matmul %2, %3, %cst {dimension_numbers = #tpu.dot_dimension_numbers<[1], [0], [0], [1], [0, 0, 1, 1], [], []>} : vector<4x200xbf16>, vector<200x8xbf16>, vector<4x8xf32> -> vector<4x8xf32>
    %cst_4 = arith.constant dense<0xFF800000> : vector<4xf32>
    %5 = vector.multi_reduction <maximumf>, %4, %cst_4 [1] : vector<4x8xf32> to vector<4xf32>
    %6 = vector.shape_cast %5 : vector<4xf32> to vector<4x1xf32>
    %7 = vector.broadcast %6 : vector<4x1xf32> to vector<4x8xf32>
    %8 = arith.subf %4, %7 : vector<4x8xf32>
    %9 = math.exp %8 : vector<4x8xf32>
    %cst_5 = arith.constant dense<0.000000e+00> : vector<4xf32>
    %10 = vector.multi_reduction <add>, %9, %cst_5 [1] : vector<4x8xf32> to vector<4xf32>
    %11 = vector.shape_cast %10 : vector<4xf32> to vector<4x1xf32>
    %12 = tpu.reciprocal %11 : vector<4x1xf32> -> vector<4x1xf32>
    %13 = vector.broadcast %12 : vector<4x1xf32> to vector<4x8xf32>
    %14 = arith.mulf %9, %13 : vector<4x8xf32>
    %c0_6 = arith.constant 0 : index
    %c0_7 = arith.constant 0 : index
    %15 = vector.load %arg3[%c0_6, %c0_7] : memref<4x8xf32, #tpu.memory_space<vmem>>, vector<4x8xf32>
    tpu.vector_store %arg3[%c0_6, %c0_7], %14 {strides = array<i32>} : memref<4x8xf32, #tpu.memory_space<vmem>>, vector<4x8xf32>,
    return
  }
  func.func @transform_0(%arg0: i32) -> (i32, i32, i32) {
    %c0_i32 = arith.constant 0 : i32
    %c0_i32_0 = arith.constant 0 : i32
    %c0_i32_1 = arith.constant 0 : i32
    %c0_i32_2 = arith.constant 0 : i32
    return %c0_i32, %c0_i32_0, %c0_i32_1 : i32, i32, i32
  }
  func.func @transform_1(%arg0: i32) -> (i32, i32) {
    %c0_i32 = arith.constant 0 : i32
    %c0_i32_0 = arith.constant 0 : i32
    %c0_i32_1 = arith.constant 0 : i32
    return %c0_i32, %c0_i32_0 : i32, i32
  }
  func.func @transform_2(%arg0: i32) -> (i32, i32) {
    %c0_i32 = arith.constant 0 : i32
    %c0_i32_0 = arith.constant 0 : i32
    %c0_i32_1 = arith.constant 0 : i32
    return %c0_i32, %c0_i32_0 : i32, i32
  }
}

</mosaic_0001>

<bundles_post_ra>
// kernel: tpu_custom_call.1
= control target key start
LH: loop header
LB: loop body
LE: loop exit
PB: predicated region body
PF: predicated region fallthrough
CT: control target
= control target key end

     0   :  { %v335_v1 = vmov 0   ;;  %v21_v3 = vlaneseq  ;;  %s437_s0 = inlined_call_operand.vmem [shape: f32[4,1,200], index: 0, kind: input, shape index: {}]   ;;  %s438_s1 = inlined_call_operand.vmem [shape: bf16[200,8], index: 1, kind: input, shape index: {}]   ;;  %s439_s2 = inlined_call_operand.hbm [shape: f32[4,8], index: 2, kind: output, shape index: {}]  }
   0x1   :  { %v294_v0 = vld [vmem:[%s438_s1] sm:$0xff]   ;;  %211 = vmatprep.subr.bf16.mxu0 %v335_v1  ;;  %v295_v2 = vld [vmem:[%s438_s1 + $0x8] sm:$0xff]   ;;  %v296_v4 = vld [vmem:[%s438_s1 + $0x10] sm:$0xff]  }
   0x2   :  { %212 = vmatpush1.bf16.msra.mxu0 %v294_v0  ;;  %v22_v5 = vshrl.u32 %v21_v3, 7  ;;  %v297_v6 = vld [vmem:[%s438_s1 + $0x18] sm:$0xff]   ;;  %v13_v8 = vld [vmem:[%s437_s0] sm:$0x3]  ;;  %v14_v9 = vld [vmem:[%s437_s0 + $0x2] sm:$0x3] }
   0x3   :  { %213 = vmatprep.subr.bf16.mxu0 %v335_v1  ;;  %v15_v10 = vld [vmem:[%s437_s0 + $0x4] sm:$0x3]  ;;  %v16_v11 = vld [vmem:[%s437_s0 + $0x6] sm:$0x3] }
   0x4   :  { %v27_v7 = vsub.s32 1, %v22_v5  ;;  %v298_v13 = vld [vmem:[%s438_s1 + $0x20] sm:$0xff]  }
   0x6   :  { %214 = vmatpush1.bf16.msra.mxu0 %v295_v2  ;;  %v28_v12 = vrot.slane %v13_v8, %v27_v7  ;;  %v36_v14 = vrot.slane %v14_v9, %v27_v7 }
   0x7   :  { %215 = vmatprep.subr.bf16.mxu0 %v335_v1 }
   0xa   :  { %216 = vmatpush1.bf16.msra.mxu0 %v296_v4 }
   0xb   :  { %217 = vmatprep.subr.bf16.mxu0 %v335_v1 }
   0xe   :  { %218 = vmatpush1.bf16.msra.mxu0 %v297_v6 }
   0xf   :  { %7 = vsyncpa [#allocation3], 0  ;;  %219 = vmatprep.subr.bf16.mxu0 %v335_v1  ;;  %v44_v15 = vrot.slane %v15_v10, %v27_v7  ;;  %v52_v16 = vrot.slane %v16_v11, %v27_v7  ;;  %v62_v17 = vpack.c.bf16 %v28_v12, %v28_v12  ;;  %v64_v18 = vpack.c.bf16 %v36_v14, %v36_v14  ;;  %v299_v21 = vld [vmem:[%s438_s1 + $0x28] sm:$0xff]   ;;  %v300_v30 = vld [vmem:[%s438_s1 + $0x30] sm:$0xff]  }
  0x10   :  { %vm111_vm0 = vcmask 1041409   ;;  %v23_v26 = vsub.s32 0, %v22_v5  ;;  %vm114_vm1 = vcmask 1042434   ;;  %vm117_vm2 = vcmask 1043459   ;;  %v301_v36 = vld [vmem:[%s438_s1 + $0x38] sm:$0xff]   ;;  %v302_v40 = vld [vmem:[%s438_s1 + $0x40] sm:$0xff]  }
  0x11   :  { %v66_v19 = vpack.c.bf16 %v44_v15, %v44_v15  ;;  %v68_v20 = vpack.c.bf16 %v52_v16, %v52_v16  ;;  %v103_v22 = vunpack.c.l.b16 %v62_v17  ;;  %v105_v23 = vunpack.c.l.b16 %v64_v18  ;;  %v303_v45 = vld [vmem:[%s438_s1 + $0x48] sm:$0xff]   ;;  %v304_v50 = vld [vmem:[%s438_s1 + $0x50] sm:$0xff]   ;;  %v305_v54 = vld [vmem:[%s438_s1 + $0x58] sm:$0xff]  }
  0x12   :  { %220 = vmatpush1.bf16.msra.mxu0 %v298_v13  ;;  %v32_v33 = vrot.slane %v14_v9, %v23_v26  ;;  %vm203_vm3 = vcmask 588800   ;;  %v40_v37 = vrot.slane %v15_v10, %v23_v26  ;;  %v24_v38 = vrot.slane %v13_v8, %v23_v26  ;;  %v306_v56 = vld [vmem:[%s438_s1 + $0x60] ss:$0 sps:$4 sm:$0xff]   ;;  %s336_s1 = smov [#allocation2]  }
  0x13   :  { %221 = vmatprep.subr.bf16.mxu0 %v335_v1  ;;  %v107_v24 = vunpack.c.l.b16 %v66_v19  ;;  %v109_v25 = vunpack.c.l.b16 %v68_v20  ;;  %v119_v27 = vrot.slane %v105_v23, 7  ;;  %v48_v41 = vrot.slane %v16_v11, %v23_v26  ;;  %s270_s14 = sshll.u32 %s336_s1, 4  ;;  %s271_s14 = int_to_ptr.vmem [resolvable:$true] %s270_s14 }
  0x14   :  { %v63_v39 = vpack.c.bf16 %v32_v33, %v32_v33  ;;  %v65_v42 = vpack.c.bf16 %v40_v37, %v40_v37  ;;  %v61_v43 = vpack.c.bf16 %v24_v38, %v24_v38  ;;  %vm207_vm4 = vcmask 1043456   ;;  %s311_s15 = scalar_lea.vmem %s271_s14, 64  ;;  %p316_p1 = scmp.lt.s32.totalorder %s271_s14, %s271_s14 }
  0x15   :  { %v121_v28 = vrot.slane %v107_v24, 6  ;;  %v123_v29 = vrot.slane %v109_v25, 5  ;;  %v120_v31 = vsel %vm111_vm0, %v119_v27, %v103_v22  ;;  %v67_v46 = vpack.c.bf16 %v48_v41, %v48_v41  ;;  %p312_p0 = scmp.ne.s32.totalorder %s271_s14, %s311_s15  ;;  %p317_p2 = scmp.lt.s32.totalorder %s311_s15, %s311_s15 }
  0x16   :  { %222 = vmatpush1.bf16.msra.mxu0 %v299_v21  ;;  %v104_v44 = vunpack.c.l.b16 %v63_v39  ;;  %v106_v47 = vunpack.c.l.b16 %v65_v42  ;;  %v102_v48 = vunpack.c.l.b16 %v61_v43  ;;  %v209_v59 = vsel %vm207_vm4, %v306_v56, 0 }
  0x17   :  { %223 = vmatprep.subr.bf16.mxu0 %v335_v1  ;;  %v122_v32 = vsel %vm114_vm1, %v121_v28, %v120_v31  ;;  %v108_v51 = vunpack.c.l.b16 %v67_v46  ;;  %vm251_vm5 = vcmask 60416   ;;  %p318_p3 = por %p317_p2, %p316_p1 }
  0x18   :  { %v124_v34 = vsel %vm117_vm2, %v123_v29, %v122_v32  ;;  %v110_v49 = vrot.slane %v104_v44, 7  ;;  %v113_v52 = vrot.slane %v106_v47, 6 }
  0x19   :  { %v126_v35 = vpack.c.b16 %v124_v34, %v124_v34  ;;  %v116_v55 = vrot.slane %v108_v51, 5  ;;  %p319_p4 = pnand %p318_p3, %p312_p0 }
  0x1a   :  { %224 = vmatpush1.bf16.msra.mxu0 %v300_v30  ;;  %v112_v53 = vsel %vm111_vm0, %v110_v49, %v102_v48 }
  0x1b   :  { %225 = vmatprep.subr.bf16.mxu0 %v335_v1  ;;  %291 = vmatprep.mubr.msk.bf16.mxu0 %vm203_vm3, %v126_v35  ;;  %v115_v57 = vsel %vm114_vm1, %v113_v52, %v112_v53 }
  0x1c   :  { %v118_v58 = vsel %vm117_vm2, %v116_v55, %v115_v57 }
  0x1d   :  { %v125_v60 = vpack.c.b16 %v118_v58, %v118_v58 }
  0x1e   :  { %226 = vmatpush1.bf16.msra.mxu0 %v301_v36 }
  0x1f   :  { %227 = vmatprep.subr.bf16.mxu0 %v335_v1 }
  0x22   :  { %228 = vmatpush1.bf16.msra.mxu0 %v302_v40 }
  0x23   :  { %229 = vmatprep.subr.bf16.mxu0 %v335_v1 }
  0x26   :  { %230 = vmatpush1.bf16.msra.mxu0 %v303_v45 }
  0x27   :  { %231 = vmatprep.subr.bf16.mxu0 %v335_v1 }
  0x2a   :  { %232 = vmatpush1.bf16.msra.mxu0 %v304_v50 }
  0x2b   :  { %233 = vmatprep.subr.bf16.mxu0 %v335_v1 }
  0x2e   :  { %234 = vmatpush1.bf16.msra.mxu0 %v305_v54 }
  0x2f   :  { %235 = vmatprep.subr.bf16.mxu0 %v335_v1 }
  0x32   :  { %236 = vmatpush1.bf16.msra.mxu0 %v209_v59 }
  0x35   :  { %244 = vmatmul.mubr.bf16.vlgmr.msra.gmra.mrb[0].mxu0 %v125_v60 }
 0x108   :  { %v245_v61 = vpop.f32.mrb[0].mxu0 }
 0x109   :  { %v247_v62 = vpop.f32.mrb[1].mxu0  ;;  %v252_v63 = vsel %vm251_vm5, %v245_v61, -inf }
 0x10a   :  { %253 = vmax.xlane.f32.xlu0 %v252_v63  ;;  %v248_v0 = vpop.f32.mrb[2].mxu0 }
 0x10b   :  { %v249_v2 = vpop.f32.mrb[3].mxu0 }
 0x197   :  { %v254_v3 = vpop.xlane.xlu0 %253 }
 0x198   :  { %v255_v4 = vsub.f32 %v245_v61, %v254_v3 }
 0x19a   :  { %v256_v5 = vmul.f32 1.442695, %v255_v4 }
 0x19c   :  { %307 = vpow2.f32 %v256_v5 }
 0x1a6   :  { %v308_v6 = vpop.eup %307 }
 0x1a7   :  { %v258_v7 = vsel %vm251_vm5, %v308_v6, 0.0 }
 0x1a8   :  { %259 = vadd.xlane.f32.xlu0 %v258_v7 }
 0x235   :  { %v260_v1 = vpop.xlane.xlu0 %259 }
 0x236   :  { %309 = vrcp.f32 %v260_v1 }
 0x240   :  { %v310_v8 = vpop.eup %309 }
 0x241   :  { %v262_v9 = vmul.f32 %v310_v8, %v308_v6 }
 0x243   :  { %263 = vst.msk [vmem:[#allocation2] sm:$0xf] %vm251_vm5, %v262_v9 }
 0x244   :  { %322 = shalt.err (!%p319_p4)
}
 0x245   :  { %s323_s18 = scalar_lea.hbm %s439_s2, 64 }
 0x246   :  { %p324_p5 = scmp.ne.s32.totalorder %s439_s2, %s323_s18  ;;  %p327_p6 = scmp.lt.u32.totalorder %s323_s18, %s439_s2 }
 0x248   :  { %p329_p7 = pnand %p327_p6, %p324_p5 }
 0x24a   :  { %332 = shalt.err (!%p329_p7)
}
 0x24b   :  { %273 = dma.vmem_to_hbm [thread:$0]  %s271_s14, 64, %s439_s2, [#allocation3]  }
 0x24c   :  { %333 = dma.done.wait [#allocation3], 64  }
 0x24d   :  { %334 = vsyncadd [#allocation3], 4294967232 }
 0x24e   :  { %277 = vsyncpa [#allocation3], 1 }

</bundles_post_ra>
